<compile_context>
chip_gen: v5e
topology: v5e:2x2
jax: 0.10.0
libtpu: 0.0.40
codegen_flags: <defaults>
</compile_context>

<pallas_src>
import jax
import jax.numpy as jnp
from jax.experimental import pallas as pl
from jax.experimental.pallas import tpu as pltpu


# ----------------------------------------------------------------------------
# Fused kernel.  One grid step = one batch tile of x AND aug_x.
#   per step : sum-pool(seq) * 1/S -> linear(D_in,E) -> linear(E,P)+bias
#              -> L2 normalize -> stash features in persistent VMEM scratch
#   last step: sim (B,B) = (x_feat/temp) @ aug_feat.T + symmetric InfoNCE loss
# ----------------------------------------------------------------------------
def cl_fused_kernel(inv_temp_ref, x_ref, ax_ref, w_enc_ref, w_proj_ref, b_ref,
                    loss_ref, featx_ref, feata_ref):
    i = pl.program_id(0)
    tb, seq_len, _ = x_ref.shape
    inv_s = 1.0 / seq_len

    # --- encoder stand-in: mean-pool (1/S applied in-kernel), pooled in f32 --
    px = jnp.sum(x_ref[...].astype(jnp.float32), axis=1) * inv_s          # (TB, D_in)
    pa = jnp.sum(ax_ref[...].astype(jnp.float32), axis=1) * inv_s         # (TB, D_in)
    pooled = jnp.concatenate([px, pa], axis=0)                            # (2TB, D_in)
    pooled = pooled.astype(w_enc_ref.dtype)                               # MXU dtype

    # --- encode + project (f32 accumulation on the MXU) ----------------------
    embd = jnp.dot(pooled, w_enc_ref[...],
                   preferred_element_type=jnp.float32)                    # (2TB, E)
    h = jnp.dot(embd.astype(w_proj_ref.dtype), w_proj_ref[...],
                preferred_element_type=jnp.float32) + b_ref[...]          # (2TB, P)

    # --- L2 normalize: rsqrt on squared norm == F.normalize(eps=1e-12) -------
    sumsq = jnp.sum(h * h, axis=-1, keepdims=True)                        # (2TB, 1)
    feat = h * jax.lax.rsqrt(jnp.maximum(sumsq, 1e-24))                   # (2TB, P) f32

    row = pl.multiple_of(i * tb, tb)
    featx_ref[pl.ds(row, tb), :] = feat[:tb]
    feata_ref[pl.ds(row, tb), :] = feat[tb:]

    # --- epilogue: similarity + two-direction diagonal-target CE -------------
    @pl.when(i == pl.num_programs(0) - 1)
    def _():
        inv_temp = inv_temp_ref[0, 0]
        fx = featx_ref[...]                                               # (B, P)
        fa = feata_ref[...]                                               # (B, P)
        b = fx.shape[0]

        # sim = (x_feat @ aug_feat.T) / temp; 1/temp folded into the LHS,
        # NT-style contraction (no materialized transpose of fa).
        sim = jax.lax.dot_general(
            fx * inv_temp, fa,
            dimension_numbers=(((1,), (1,)), ((), ())),
            preferred_element_type=jnp.float32)                           # (B, B)

        # Diagonal term once, straight from the features (no iota / diag mask).
        trace = inv_temp * jnp.sum(fx * fa)

        # Single exp pass via a global-max shift (|sim| <= 1/temp after L2 norm).
        gmax = jnp.max(sim)
        e = jnp.exp(sim - gmax)
        lse_r = gmax + jnp.log(jnp.sum(e, axis=1, keepdims=True))         # (B, 1)
        lse_c = gmax + jnp.log(jnp.sum(e, axis=0, keepdims=True))         # (1, B)

        loss_i2a = jnp.mean(lse_r) - trace / b
        loss_a2i = jnp.mean(lse_c) - trace / b
        loss_ref[0, 0] = 0.5 * (loss_i2a + loss_a2i)


# ----------------------------------------------------------------------------
# Full forward pass (CLModel.forward) -- one batch-tiled pallas_call
# ----------------------------------------------------------------------------
def cl_model_forward(x, aug_x, params, *, tile_b=None, compute_dtype=None):
    B, S, D = x.shape
    E, P = params["w_proj"].shape

    if tile_b is None:
        tile_b = min(B, 128)
    assert B % tile_b == 0, "TODO(synk): ragged last batch tile not handled"
    num_tiles = B // tile_b

    if compute_dtype is not None:
        # In production the activations / weights would already live in bf16;
        # these casts are only for the smoke test in __main__.
        x = x.astype(compute_dtype)
        aug_x = aug_x.astype(compute_dtype)
        w_enc = params["w_enc"].astype(compute_dtype)
        w_proj = params["w_proj"].astype(compute_dtype)
    else:
        w_enc = params["w_enc"]
        w_proj = params["w_proj"]

    inv_temp = (jnp.float32(1.0) /
                jnp.asarray(params["temp"], jnp.float32)).reshape(1, 1)
    b_proj = params["b_proj"].reshape(1, P).astype(jnp.float32)

    itemsize = x.dtype.itemsize
    w_itemsize = w_enc.dtype.itemsize

    # Advisory cost so XLA schedules surrounding ops around the custom call.
    cost = pl.CostEstimate(
        flops=2 * (2 * B) * D * E + 2 * (2 * B) * E * P + 2 * B * B * P,
        transcendentals=B * B + 4 * B,
        bytes_accessed=2 * B * S * D * itemsize
        + (D * E + E * P) * w_itemsize + P * 4 + 4,
    )

    # Explicit VMEM budget: double-buffered input tiles + resident weights
    # + persistent feature scratch + (B,B) epilogue working set + headroom.
    vmem_est = (
        2 * 2 * tile_b * S * D * itemsize
        + (D * E + E * P) * w_itemsize + P * 4
        + 2 * B * P * 4
        + 2 * B * B * 4
        + 8 * tile_b * max(E, P) * 4
    )
    vmem_limit = int(min(64 * 2 ** 20, max(2 * vmem_est, 16 * 2 ** 20)))

    # TODO(synk): for very large B (where the (B,B) sim no longer fits VMEM) the
    #             epilogue should become a second grid phase with flash-style online
    #             row/column LSE over (TBr, TBc) sim blocks; that would also let the
    #             feature phase be marked "parallel" for v7x megacore.
    grid_spec = pltpu.PrefetchScalarGridSpec(
        num_scalar_prefetch=0,
        grid=(num_tiles,),
        in_specs=[
            pl.BlockSpec(memory_space=pltpu.SMEM),                 # inv_temp (1,1)
            pl.BlockSpec((tile_b, S, D), lambda i: (i, 0, 0)),     # x batch tile
            pl.BlockSpec((tile_b, S, D), lambda i: (i, 0, 0)),     # aug_x batch tile
            pl.BlockSpec(memory_space=pltpu.VMEM),                 # w_enc (resident)
            pl.BlockSpec(memory_space=pltpu.VMEM),                 # w_proj (resident)
            pl.BlockSpec(memory_space=pltpu.VMEM),                 # b_proj (resident)
        ],
        out_specs=pl.BlockSpec(memory_space=pltpu.SMEM),           # (1,1) loss
        scratch_shapes=[
            pltpu.VMEM((B, P), jnp.float32),                       # x features
            pltpu.VMEM((B, P), jnp.float32),                       # aug features
        ],
    )

    loss = pl.pallas_call(
        cl_fused_kernel,
        out_shape=jax.ShapeDtypeStruct((1, 1), jnp.float32),
        grid_spec=grid_spec,
        compiler_params=pltpu.CompilerParams(
            dimension_semantics=("arbitrary",),
            vmem_limit_bytes=vmem_limit,
        ),
        cost_estimate=cost,
    )(inv_temp, x, aug_x, w_enc, w_proj, b_proj)
    return loss[0, 0]


# ----------------------------------------------------------------------------
# Pure-JAX reference for validation.
# ----------------------------------------------------------------------------
def cl_model_forward_ref(x, aug_x, params):
    def embd(v):
        return jnp.mean(v, axis=1) @ params["w_enc"]

    def feat(e):
        h = e @ params["w_proj"] + params["b_proj"]
        n = jnp.sqrt(jnp.sum(h * h, axis=-1, keepdims=True))
        return h / jnp.maximum(n, 1e-12)

    xf, af = feat(embd(x)), feat(embd(aug_x))
    sim = (xf @ af.T) / params["temp"]
    tgt = jnp.eye(sim.shape[0], dtype=jnp.float32)
    l_i2a = jnp.mean(-jnp.sum(jax.nn.log_softmax(sim, axis=-1) * tgt, axis=-1))
    l_a2i = jnp.mean(-jnp.sum(jax.nn.log_softmax(sim.T, axis=-1) * tgt, axis=-1))
    return 0.5 * (l_i2a + l_a2i)


if __name__ == "__main__":
    # Small but lane-friendly shapes (D_in, P multiples of 128) so layouts match prod.
    B, S, D_IN = 16, 8, 128
    ENC_WIDTH = 256            # stand-in for enc_width=2048 (small)
    PROJ_DIM = 128             # stand-in for proj_dim=256 (small)
    TILE_B = 8                 # 2 grid steps -> exercises tiling + persistent scratch
    TEMP_SCALE = 0.07          # nn.Parameter(1.0) * temp_scale

    key = jax.random.PRNGKey(0)
    k_x, k_ax, k_we, k_wp, k_bp = jax.random.split(key, 5)

    x = jax.random.normal(k_x, (B, S, D_IN), jnp.float32)
    aug_x = x + 0.1 * jax.random.normal(k_ax, (B, S, D_IN), jnp.float32)

    params = {
        "w_enc": jax.random.normal(k_we, (D_IN, ENC_WIDTH), jnp.float32) * 0.05,
        "w_proj": jax.random.normal(k_wp, (ENC_WIDTH, PROJ_DIM), jnp.float32) * 0.05,
        "b_proj": jax.random.normal(k_bp, (PROJ_DIM,), jnp.float32) * 0.01,
        "temp": jnp.float32(1.0) * TEMP_SCALE,
    }

    # f32 path: must match the reference tightly.
    loss = jax.block_until_ready(cl_model_forward(x, aug_x, params, tile_b=TILE_B))
    loss_ref = jax.block_until_ready(cl_model_forward_ref(x, aug_x, params))
    assert jnp.isfinite(loss), "non-finite loss"
    assert jnp.allclose(loss, loss_ref, rtol=1e-3, atol=1e-3), (loss, loss_ref)

    # bf16 MXU path (f32 accumulation, f32 normalize/softmax): loose tolerance by
    # design; re-validate tolerances at production K before adopting.
    loss_bf16 = jax.block_until_ready(
        cl_model_forward(x, aug_x, params, tile_b=TILE_B,
                         compute_dtype=jnp.bfloat16))
    assert jnp.isfinite(loss_bf16), "non-finite bf16 loss"
    assert jnp.allclose(loss_bf16, loss_ref, rtol=5e-2, atol=5e-2), (loss_bf16, loss_ref)

    print("KERNEL_OK")
</pallas_src>

<mosaic_0001>
module attributes {stable_mosaic.version = 11 : i64} {
  func.func @cl_fused_kernel(%arg0: i32, %arg1: memref<1x1xf32, #tpu.memory_space<smem>>, %arg2: memref<8x8x128xf32, #tpu.memory_space<vmem>>, %arg3: memref<8x8x128xf32, #tpu.memory_space<vmem>>, %arg4: memref<128x256xf32, #tpu.memory_space<vmem>>, %arg5: memref<256x128xf32, #tpu.memory_space<vmem>>, %arg6: memref<1x128xf32, #tpu.memory_space<vmem>>, %arg7: memref<1x1xf32, #tpu.memory_space<smem>>, %arg8: memref<16x128xf32, #tpu.memory_space<vmem>>, %arg9: memref<16x128xf32, #tpu.memory_space<vmem>>) attributes {dimension_semantics = [#tpu.dimension_semantics<arbitrary>], iteration_bounds = array<i64: 2>, scalar_prefetch = 0 : i64, scratch_operands = 2 : i64, tpu.core_type = #tpu.core_type<tc>, window_params = [{transform_indices = @transform_0, window_bounds = array<i64: 1, 1>}, {transform_indices = @transform_1, window_bounds = array<i64: 8, 8, 128>}, {transform_indices = @transform_2, window_bounds = array<i64: 8, 8, 128>}, {pipeline_mode = #tpu.pipeline_mode<synchronous>, transform_indices = @transform_3, window_bounds = array<i64: 128, 256>}, {pipeline_mode = #tpu.pipeline_mode<synchronous>, transform_indices = @transform_4, window_bounds = array<i64: 256, 128>}, {pipeline_mode = #tpu.pipeline_mode<synchronous>, transform_indices = @transform_5, window_bounds = array<i64: 1, 128>}, {transform_indices = @transform_6, window_bounds = array<i64: 1, 1>}]} {
    %c0 = arith.constant 0 : index
    %c0_0 = arith.constant 0 : index
    %c0_1 = arith.constant 0 : index
    %0 = vector.load %arg2[%c0, %c0_0, %c0_1] : memref<8x8x128xf32, #tpu.memory_space<vmem>>, vector<8x8x128xf32>
    %cst = arith.constant dense<0.000000e+00> : vector<8x128xf32>
    %1 = vector.multi_reduction <add>, %0, %cst [1] : vector<8x8x128xf32> to vector<8x128xf32>
    %cst_2 = arith.constant 1.250000e-01 : f32
    %2 = vector.broadcast %cst_2 : f32 to vector<8x128xf32>
    %3 = arith.mulf %1, %2 : vector<8x128xf32>
    %c0_3 = arith.constant 0 : index
    %c0_4 = arith.constant 0 : index
    %c0_5 = arith.constant 0 : index
    %4 = vector.load %arg3[%c0_3, %c0_4, %c0_5] : memref<8x8x128xf32, #tpu.memory_space<vmem>>, vector<8x8x128xf32>
    %cst_6 = arith.constant dense<0.000000e+00> : vector<8x128xf32>
    %5 = vector.multi_reduction <add>, %4, %cst_6 [1] : vector<8x8x128xf32> to vector<8x128xf32>
    %cst_7 = arith.constant 1.250000e-01 : f32
    %6 = vector.broadcast %cst_7 : f32 to vector<8x128xf32>
    %7 = arith.mulf %5, %6 : vector<8x128xf32>
    %8 = tpu.concatenate %3, %7 in 0 : vector<8x128xf32>, vector<8x128xf32> -> vector<16x128xf32>
    %c0_8 = arith.constant 0 : index
    %c0_9 = arith.constant 0 : index
    %9 = vector.load %arg4[%c0_8, %c0_9] : memref<128x256xf32, #tpu.memory_space<vmem>>, vector<128x256xf32>
    %cst_10 = arith.constant dense<0.000000e+00> : vector<16x256xf32>
    %10 = tpu.matmul %8, %9, %cst_10 {dimension_numbers = #tpu.dot_dimension_numbers<[1], [0], [0], [1], [0, 0, 1, 1], [], []>} : vector<16x128xf32>, vector<128x256xf32>, vector<16x256xf32> -> vector<16x256xf32>
    %c0_11 = arith.constant 0 : index
    %c0_12 = arith.constant 0 : index
    %11 = vector.load %arg5[%c0_11, %c0_12] : memref<256x128xf32, #tpu.memory_space<vmem>>, vector<256x128xf32>
    %cst_13 = arith.constant dense<0.000000e+00> : vector<16x128xf32>
    %12 = tpu.matmul %10, %11, %cst_13 {dimension_numbers = #tpu.dot_dimension_numbers<[1], [0], [0], [1], [0, 0, 1, 1], [], []>} : vector<16x256xf32>, vector<256x128xf32>, vector<16x128xf32> -> vector<16x128xf32>
    %c0_14 = arith.constant 0 : index
    %c0_15 = arith.constant 0 : index
    %13 = vector.load %arg6[%c0_14, %c0_15] : memref<1x128xf32, #tpu.memory_space<vmem>>, vector<1x128xf32>
    %14 = vector.broadcast %13 : vector<1x128xf32> to vector<16x128xf32>
    %15 = arith.addf %12, %14 : vector<16x128xf32>
    %16 = arith.mulf %15, %15 : vector<16x128xf32>
    %cst_16 = arith.constant dense<0.000000e+00> : vector<16xf32>
    %17 = vector.multi_reduction <add>, %16, %cst_16 [1] : vector<16x128xf32> to vector<16xf32>
    %18 = vector.shape_cast %17 : vector<16xf32> to vector<16x1xf32>
    %cst_17 = arith.constant 1.000000e-24 : f32
    %19 = vector.broadcast %cst_17 : f32 to vector<16x1xf32>
    %20 = arith.maximumf %18, %19 : vector<16x1xf32>
    %21 = math.rsqrt %20 : vector<16x1xf32>
    %22 = vector.broadcast %21 : vector<16x1xf32> to vector<16x128xf32>
    %23 = arith.mulf %15, %22 : vector<16x128xf32>
    %c8_i32 = arith.constant 8 : i32
    %24 = arith.muli %arg0, %c8_i32 : i32
    %25 = tpu.assume_multiple %24, 8 : i32
    %26 = vector.extract_strided_slice %23 {offsets = [0, 0], sizes = [8, 128], strides = [1, 1]} : vector<16x128xf32> to vector<8x128xf32>
    %27 = arith.index_cast %25 : i32 to index
    %c0_18 = arith.constant 0 : index
    %28 = vector.load %arg8[%27, %c0_18] : memref<16x128xf32, #tpu.memory_space<vmem>>, vector<8x128xf32>
    tpu.vector_store %arg8[%27, %c0_18], %26 {strides = array<i32>} : memref<16x128xf32, #tpu.memory_space<vmem>>, vector<8x128xf32>,
    %29 = vector.extract_strided_slice %23 {offsets = [8, 0], sizes = [8, 128], strides = [1, 1]} : vector<16x128xf32> to vector<8x128xf32>
    %30 = arith.index_cast %25 : i32 to index
    %c0_19 = arith.constant 0 : index
    %31 = vector.load %arg9[%30, %c0_19] : memref<16x128xf32, #tpu.memory_space<vmem>>, vector<8x128xf32>
    tpu.vector_store %arg9[%30, %c0_19], %29 {strides = array<i32>} : memref<16x128xf32, #tpu.memory_space<vmem>>, vector<8x128xf32>,
    %c1_i32 = arith.constant 1 : i32
    %32 = arith.cmpi eq, %arg0, %c1_i32 : i32
    %33 = arith.extui %32 : i1 to i32
    %c0_i32 = arith.constant 0 : i32
    %34 = arith.cmpi ne, %33, %c0_i32 : i32
    scf.if %34 {
      %c0_20 = arith.constant 0 : index
      %c0_21 = arith.constant 0 : index
      %35 = memref.load %arg1[%c0_20, %c0_21] : memref<1x1xf32, #tpu.memory_space<smem>>
      %c0_22 = arith.constant 0 : index
      %c0_23 = arith.constant 0 : index
      %36 = vector.load %arg8[%c0_22, %c0_23] : memref<16x128xf32, #tpu.memory_space<vmem>>, vector<16x128xf32>
      %c0_24 = arith.constant 0 : index
      %c0_25 = arith.constant 0 : index
      %37 = vector.load %arg9[%c0_24, %c0_25] : memref<16x128xf32, #tpu.memory_space<vmem>>, vector<16x128xf32>
      %38 = vector.broadcast %35 : f32 to vector<16x128xf32>
      %39 = arith.mulf %36, %38 : vector<16x128xf32>
      %cst_26 = arith.constant dense<0.000000e+00> : vector<16x16xf32>
      %40 = tpu.matmul %39, %37, %cst_26 {dimension_numbers = #tpu.dot_dimension_numbers<[1], [1], [0], [0], [0, 0, 1, 0], [], []>} : vector<16x128xf32>, vector<16x128xf32>, vector<16x16xf32> -> vector<16x16xf32>
      %41 = arith.mulf %36, %37 : vector<16x128xf32>
      %42 = vector.shape_cast %41 : vector<16x128xf32> to vector<1x16x128xf32>
      %cst_27 = arith.constant dense<0.000000e+00> : vector<1xf32>
      %43 = vector.multi_reduction <add>, %42, %cst_27 [1, 2] : vector<1x16x128xf32> to vector<1xf32>
      %44 = vector.shape_cast %43 : vector<1xf32> to vector<1x1x1xf32>
      %45 = vector.extract %44[0, 0, 0] : f32 from vector<1x1x1xf32>
      %46 = arith.mulf %35, %45 : f32
      %47 = vector.shape_cast %40 : vector<16x16xf32> to vector<1x16x16xf32>
      %cst_28 = arith.constant dense<0xFF800000> : vector<1xf32>
      %48 = vector.multi_reduction <maximumf>, %47, %cst_28 [1, 2] : vector<1x16x16xf32> to vector<1xf32>
      %49 = vector.shape_cast %48 : vector<1xf32> to vector<1x1x1xf32>
      %50 = vector.extract %49[0, 0, 0] : f32 from vector<1x1x1xf32>
      %51 = vector.broadcast %50 : f32 to vector<16x16xf32>
      %52 = arith.subf %40, %51 : vector<16x16xf32>
      %53 = math.exp %52 : vector<16x16xf32>
      %cst_29 = arith.constant dense<0.000000e+00> : vector<16xf32>
      %54 = vector.multi_reduction <add>, %53, %cst_29 [1] : vector<16x16xf32> to vector<16xf32>
      %55 = vector.shape_cast %54 : vector<16xf32> to vector<16x1xf32>
      %56 = math.log %55 : vector<16x1xf32>
      %57 = vector.broadcast %50 : f32 to vector<16x1xf32>
      %58 = arith.addf %57, %56 : vector<16x1xf32>
      %cst_30 = arith.constant dense<0.000000e+00> : vector<16xf32>
      %59 = vector.multi_reduction <add>, %53, %cst_30 [0] : vector<16x16xf32> to vector<16xf32>
      %60 = vector.shape_cast %59 : vector<16xf32> to vector<1x16xf32>
      %61 = math.log %60 : vector<1x16xf32>
      %62 = vector.broadcast %50 : f32 to vector<1x16xf32>
      %63 = arith.addf %62, %61 : vector<1x16xf32>
      %64 = vector.shape_cast %58 : vector<16x1xf32> to vector<1x16x1xf32>
      %cst_31 = arith.constant dense<0.000000e+00> : vector<1xf32>
      %65 = vector.multi_reduction <add>, %64, %cst_31 [1, 2] : vector<1x16x1xf32> to vector<1xf32>
      %66 = vector.shape_cast %65 : vector<1xf32> to vector<1x1x1xf32>
      %67 = vector.extract %66[0, 0, 0] : f32 from vector<1x1x1xf32>
      %cst_32 = arith.constant 1.600000e+01 : f32
      %68 = arith.divf %67, %cst_32 : f32
      %cst_33 = arith.constant 1.600000e+01 : f32
      %69 = arith.divf %46, %cst_33 : f32
      %70 = arith.subf %68, %69 : f32
      %71 = vector.shape_cast %63 : vector<1x16xf32> to vector<1x1x16xf32>
      %cst_34 = arith.constant dense<0.000000e+00> : vector<1xf32>
      %72 = vector.multi_reduction <add>, %71, %cst_34 [1, 2] : vector<1x1x16xf32> to vector<1xf32>
      %73 = vector.shape_cast %72 : vector<1xf32> to vector<1x1x1xf32>
      %74 = vector.extract %73[0, 0, 0] : f32 from vector<1x1x1xf32>
      %cst_35 = arith.constant 1.600000e+01 : f32
      %75 = arith.divf %74, %cst_35 : f32
      %cst_36 = arith.constant 1.600000e+01 : f32
      %76 = arith.divf %46, %cst_36 : f32
      %77 = arith.subf %75, %76 : f32
      %78 = arith.addf %70, %77 : f32
      %cst_37 = arith.constant 5.000000e-01 : f32
      %79 = arith.mulf %cst_37, %78 : f32
      %c0_38 = arith.constant 0 : index
      %c0_39 = arith.constant 0 : index
      %80 = memref.load %arg7[%c0_38, %c0_39] : memref<1x1xf32, #tpu.memory_space<smem>>
      memref.store %79, %arg7[%c0_38, %c0_39] : memref<1x1xf32, #tpu.memory_space<smem>>
    } else {
    }
    return
  }
  func.func @transform_0(%arg0: i32) -> (i32, i32) {
    %c0_i32 = arith.constant 0 : i32
    %c0_i32_0 = arith.constant 0 : i32
    %c0_i32_1 = arith.constant 0 : i32
    return %c0_i32, %c0_i32_0 : i32, i32
  }
  func.func @transform_1(%arg0: i32) -> (i32, i32, i32) {
    %c0_i32 = arith.constant 0 : i32
    %c0_i32_0 = arith.constant 0 : i32
    %c0_i32_1 = arith.constant 0 : i32
    return %arg0, %c0_i32, %c0_i32_0 : i32, i32, i32
  }
  func.func @transform_2(%arg0: i32) -> (i32, i32, i32) {
    %c0_i32 = arith.constant 0 : i32
    %c0_i32_0 = arith.constant 0 : i32
    %c0_i32_1 = arith.constant 0 : i32
    return %arg0, %c0_i32, %c0_i32_0 : i32, i32, i32
  }
  func.func @transform_3(%arg0: i32) -> (i32, i32) {
    %c0_i32 = arith.constant 0 : i32
    %c0_i32_0 = arith.constant 0 : i32
    %c0_i32_1 = arith.constant 0 : i32
    return %c0_i32, %c0_i32_0 : i32, i32
  }
  func.func @transform_4(%arg0: i32) -> (i32, i32) {
    %c0_i32 = arith.constant 0 : i32
    %c0_i32_0 = arith.constant 0 : i32
    %c0_i32_1 = arith.constant 0 : i32
    return %c0_i32, %c0_i32_0 : i32, i32
  }
  func.func @transform_5(%arg0: i32) -> (i32, i32) {
    %c0_i32 = arith.constant 0 : i32
    %c0_i32_0 = arith.constant 0 : i32
    %c0_i32_1 = arith.constant 0 : i32
    return %c0_i32, %c0_i32_0 : i32, i32
  }
  func.func @transform_6(%arg0: i32) -> (i32, i32) {
    %c0_i32 = arith.constant 0 : i32
    %c0_i32_0 = arith.constant 0 : i32
    %c0_i32_1 = arith.constant 0 : i32
    return %c0_i32, %c0_i32_0 : i32, i32
  }
}

</mosaic_0001>

<bundles_post_ra>
// kernel: tpu_custom_call.1
= control target key start
LH: loop header
LB: loop body
LE: loop exit
PB: predicated region body
PF: predicated region fallthrough
CT: control target
= control target key end

     0   :  { %s1507_s0 = inlined_call_operand.<no memory space> [shape: f32[1,1], index: 0, kind: input, shape index: {}]   ;;  %s1508_s1 = inlined_call_operand.hbm [shape: f32[16,8,128], index: 1, kind: input, shape index: {}]   ;;  %s1509_s2 = inlined_call_operand.hbm [shape: f32[16,8,128], index: 2, kind: input, shape index: {}]   ;;  %s1510_s3 = inlined_call_operand.hbm [shape: f32[128,256], index: 3, kind: input, shape index: {}]   ;;  %s1511_s4 = inlined_call_operand.hbm [shape: f32[256,128], index: 4, kind: input, shape index: {}]   ;;  %s1512_s5 = inlined_call_operand.vmem [shape: f32[1,128], index: 5, kind: input, shape index: {}]   ;;  %s1513_s6 = inlined_call_operand.hbm [shape: f32[1,1], index: 6, kind: output, shape index: {}]  }
   0x1   :  { %11 = sst [smem:[#allocation4]] %s1507_s0 }
   0x2   :  { %12 = vsyncpa [#allocation6], 0 }
   0x3   :  { %14 = vsyncpa [#allocation6 + $0x1], 0 }
   0x4   :  { %15 = vsyncpa [#allocation9], 0 }
   0x5   :  { %17 = vsyncpa [#allocation9 + $0x1], 0 }
   0x6   :  { %18 = vsyncpa [#allocation12], 0 }
   0x7   :  { %19 = vsyncpa [#allocation7], 0  ;;  %s1313_s23 = smov 0   ;;  %s1315_s24 = smov 0  }
   0x8   :  { %s1317_s25 = smov 0   ;;  %s1319_s26 = smov 0  }
   0x9 LB: > { %s1332_s0 = sadd.s32 4294967295, %s1265_s26   ;;  %p66_p0 = scmp.ne.s32.totalorder %s1257_s24, %s1253_s23  ;;  %s1265_s26 = sphi %s1319_s26, %s1523_s26   ;;  %s1261_s25 = sphi %s1317_s25, %s1522_s25   ;;  %s1257_s24 = sphi %s1315_s24, %s1521_s24   ;;  %s1253_s23 = sphi %s1313_s23, %s1520_s23  }
   0xa   : > { %p67_p1 = scmp.eq.s32.totalorder %s1332_s0, 0  ;;  %p952_p2 = scmp.ge.s32.totalorder %s1265_s26, 1 }
   0xb   : > { %p187_p3 = scmp.lt.s32.totalorder %s1265_s26, 3  ;;  %s201_s30 = sshll.u32 %s1510_s3, 4  ;;  %s202_s30 = int_to_ptr.hbm [resolvable:$true] %s201_s30 }
   0xc   : > { %p1340_p4 = por %p67_p1, %p66_p0  ;;  %s1267_s8 = smov [#allocation10]  }
   0xd   : > { %p1347_p5 = pnand %p952_p2, %p187_p3  ;;  %s203_s9 = sshll.u32 %s1267_s8, 4  ;;  %s204_s9 = int_to_ptr.vmem [resolvable:$true] %s203_s9 }
   0xe   : > { %s215_s12 = sshll.u32 %s1511_s4, 4  ;;  %s1268_s13 = smov 256   ;;  %s216_s12 = int_to_ptr.hbm [resolvable:$true] %s215_s12 }
   0xf   : > { %p1003_p6 = pneg %p1347_p5  ;;  %s1269_s14 = smov 16  }
  0x10   : > { %s1270_s15 = smov [#allocation11]   ;;  %s1514_s17 = smov 128  }
  0x11   : > { %p1004_p7 = pnand %p1003_p6, %p67_p1  ;;  %s217_s16 = sshll.u32 %s1270_s15, 4  ;;  %s218_s16 = int_to_ptr.vmem [resolvable:$true] %s217_s16 }
  0x12   : > { %s1272_s18 = smov 8   ;;  %s1362_s19 = sadd.s32 1, %s1265_s26  }
  0x13   : > { %1006 = dma.hbm_to_vmem [thread:$0]  (!%p1004_p7), %s202_s30, 4096, %s204_s9, [#allocation9], %s1268_s13, %s1268_s13, %s1269_s14  }
  0x14   : > { %1009 = dma.hbm_to_vmem [thread:$0]  (!%p1004_p7), %s216_s12, 4096, %s218_s16, [#allocation12], %s1514_s17, %s1514_s17, %s1272_s18  }
  0x15   : > { %s50_s20 = ssub.s32 %s1265_s26, %s1362_s19  ;;  %s53_s21 = sadd.s32 1, %s1261_s25 }
  0x16   : > { %p51_p8 = scmp.eq.s32.totalorder %s50_s20, 0  ;;  %p60_p9 = scmp.ne.s32.totalorder %s1261_s25, %s1257_s24 }
  0x17   : > { %p61_p10 = scmp.eq.s32.totalorder %s1265_s26, 0  ;;  %p1019_p12 = scmp.lt.s32.totalorder %s1265_s26, 2 }
  0x18   : > { %s1371_s22 = scalar_select %p51_p8, %s1261_s25, %s53_s21  }
  0x19   : > { %p62_p11 = por %p61_p10, %p60_p9  ;;  %s234_s23 = sand.u32 1, %s1261_s25  }
  0x1a   : > { %s973_s28 = sshll.u32 %s1265_s26, 6  ;;  %s956_s29 = sshll.u32 %s234_s23, 6 }
  0x1b   : > { %s243_s9 = scalar_lea.hbm %s1508_s1, %s973_s28  ;;  %s238_s11 = scalar_lea.vmem [#allocation5], %s956_s29 }
  0x1c   : > { %s244_s10 = sshll.u32 %s243_s9, 4  ;;  %s246_s12 = sshll.u32 %s238_s11, 4  ;;  %s245_s10 = int_to_ptr.hbm [resolvable:$true] %s244_s10  ;;  %s247_s12 = int_to_ptr.vmem [resolvable:$true] %s246_s12 }
  0x1d   : > { %p1379_p13 = pnand %p1019_p12, %p62_p11  ;;  %s265_s16 = scalar_lea.hbm %s1509_s2, %s973_s28 }
  0x1e   : > { %s260_s20 = scalar_lea.vmem [#allocation8], %s956_s29  ;;  %s266_s30 = sshll.u32 %s265_s16, 4  ;;  %s267_s30 = int_to_ptr.hbm [resolvable:$true] %s266_s30 }
  0x1f   : > { %s1386_s21 = sshll.u32 %s260_s20, 4  ;;  %s235_s8 = scalar_lea.sflag [#allocation6], %s234_s23  ;;  %s269_s21 = int_to_ptr.vmem [resolvable:$true] %s1386_s21 }
  0x20   : > { %s1141_s9 = sshra.s32 %s245_s10, 4  ;;  %p1145_p2 = pneg %p1379_p13  ;;  %s1142_s9 = int_to_ptr.hbm [resolvable:$true] %s1141_s9 }
  0x21   : > { %s1143_s11 = scalar_lea.hbm %s1142_s9, 64  ;;  %s1148_s15 = scalar_lea.hbm %s1508_s1, 128 }
  0x22   : > { %p1144_p0 = scmp.ne.s32.totalorder %s1142_s9, %s1143_s11  ;;  %p1149_p7 = scmp.lt.s32.totalorder %s1142_s9, %s1508_s1 }
  0x23   : > { %p1150_p8 = scmp.lt.s32.totalorder %s1148_s15, %s1143_s11 }
  0x24   : > { %p1146_p3 = pnand %p1145_p2, %p1144_p0 }
  0x25   : > { %p1151_p9 = por %p1150_p8, %p1149_p7 }
  0x26   : > { %p1147_p6 = pneg %p1146_p3 }
  0x28   : > { %p1152_p10 = pnand %p1151_p9, %p1147_p6 }
  0x2a   : > { %1155 = shalt.err (!%p1152_p10)
}
  0x2b   : > { %s1519_s23 = smov 128   ;;  %s256_s17 = sand.u32 1, %s1265_s26  }
  0x2c   : > { %1013 = dma.hbm_to_vmem [thread:$0]  (!%p1379_p13), %s245_s10, 1024, %s247_s12, %s235_s8, %s1519_s23, %s1519_s23, %s1272_s18  }
  0x2d   : > { %s257_s16 = scalar_lea.sflag [#allocation9], %s256_s17  ;;  %s1171_s20 = sshra.s32 %s267_s30, 4  ;;  %s1172_s20 = int_to_ptr.hbm [resolvable:$true] %s1171_s20 }
  0x2e   : > { %s1173_s9 = scalar_lea.hbm %s1172_s20, 64  ;;  %s1178_s15 = scalar_lea.hbm %s1509_s2, 128 }
  0x2f   : > { %p1174_p11 = scmp.ne.s32.totalorder %s1172_s20, %s1173_s9  ;;  %p1179_p3 = scmp.lt.s32.totalorder %s1172_s20, %s1509_s2 }
  0x30   : > { %p1180_p6 = scmp.lt.s32.totalorder %s1178_s15, %s1173_s9 }
  0x31   : > { %p1176_p12 = pnand %p1174_p11, %p1145_p2 }
  0x32   : > { %p1181_p7 = por %p1180_p6, %p1179_p3 }
  0x33   : > { %p1177_p0 = pneg %p1176_p12 }
  0x35   : > { %p1182_p8 = pnand %p1181_p7, %p1177_p0 }
  0x37   : > { %1185 = shalt.err (!%p1182_p8)
}
  0x38   : > { %1016 = dma.hbm_to_vmem [thread:$0]  (!%p1379_p13), %s267_s30, 1024, %s269_s21, %s257_s16, %s1519_s23, %s1519_s23, %s1272_s18  }
  0x39   : > { %280 = sbr.rel (%p1347_p5) target bundleno = 1190 (0x4a6), region = 44  ;;  %s282_s26 = sand.u32 (!%p1347_p5), 1, %s1257_s24  }
  0x3a   : > { %s963_s10 = sshll.u32 (!%p1347_p5), %s282_s26, 6  ;;  %s283_s12 = scalar_lea.sflag (!%p1347_p5), [#allocation6], %s282_s26 }
  0x3b   : > { %s1423_s8 = scalar_lea.vmem (!%p1347_p5), [#allocation5], %s963_s10 }
  0x3e   : > { %1232 = dma.done.wait (%p1340_p4), %s283_s12, 1024  }
  0x3f   : > { %1234 = vsyncadd (%p1340_p4), %s283_s12, 4294966272  ;;  %s292_s13 = sand.u32 1, %s1332_s0   ;;  %s1430_s18 = scalar_lea.vmem [#allocation8], %s963_s10 }
  0x40   : > { %s293_s17 = scalar_lea.sflag [#allocation9], %s292_s13 }
  0x41   : > { %1236 = dma.done.wait (%p1340_p4), %s293_s17, 1024  }
  0x42   : > { %1238 = vsyncadd (%p1340_p4), %s293_s17, 4294966272 }
  0x43   : > { %1240 = dma.done.wait (%p67_p1), [#allocation9], 4096  }
  0x44   : > { %1242 = vsyncadd (%p67_p1), [#allocation9], 4294963200 }
  0x45   : > { %1244 = dma.done.wait (%p67_p1), [#allocation12], 4096  }
  0x46   : > { %1246 = vsyncadd (%p67_p1), [#allocation12], 4294963200  ;;  %v535_v0 = vld [vmem:[#allocation10 + $0xf0] sm:$0xff]  ;;  %v533_v1 = vld [vmem:[#allocation10 + $0xe0] sm:$0xff]  ;;  %vm474_vm0 = vcmask 1041409   ;;  %vm476_vm1 = vcmask 1042434  }
  0x47   : > { %v536_v2 = vld [vmem:[#allocation10 + $0xf8] sm:$0xff]  ;;  %537 = vmatpush.msra.mxu0 %v535_v0  ;;  %v534_v3 = vld [vmem:[#allocation10 + $0xe8] sm:$0xff]  ;;  %v531_v4 = vld [vmem:[#allocation10 + $0xd0] sm:$0xff]  ;;  %vm478_vm2 = vcmask 1043459   ;;  %vm480_vm3 = vcmask 1044484   ;;  %vm482_vm4 = vcmask 1045509  }
  0x48   : > { %560 = vmatpush.msra.mxu1 %v536_v2  ;;  %v532_v5 = vld [vmem:[#allocation10 + $0xd8] sm:$0xff]  ;;  %v529_v6 = vld [vmem:[#allocation10 + $0xc0] sm:$0xff]  ;;  %v530_v7 = vld [vmem:[#allocation10 + $0xc8] sm:$0xff]  ;;  %vm484_vm5 = vcmask 1046534   ;;  %vm486_vm6 = vcmask 1047559   ;;  %s967_s21 = sshll.u32 %s1332_s0, 3 }
  0x49   : > { %538 = vmatpush.msra.mxu0 %v533_v1  ;;  %v527_v8 = vld [vmem:[#allocation10 + $0xb0] sm:$0xff]  ;;  %v528_v9 = vld [vmem:[#allocation10 + $0xb8] sm:$0xff]  ;;  %v525_v10 = vld [vmem:[#allocation10 + $0xa0] sm:$0xff]  ;;  %s696_s30 = scalar_lea.vmem [#allocation2], %s967_s21  ;;  %s698_s23 = scalar_lea.vmem [#allocation3], %s967_s21 }
  0x4a   : > { %561 = vmatpush.msra.mxu1 %v534_v3  ;;  %v526_v11 = vld [vmem:[#allocation10 + $0xa8] sm:$0xff]  ;;  %v523_v12 = vld [vmem:[#allocation10 + $0x90] sm:$0xff]  ;;  %v524_v13 = vld [vmem:[#allocation10 + $0x98] sm:$0xff]  ;;  %p968_p1 = scmp.ne.s32.totalorder %s1332_s0, 1 }
  0x4b   : > { %539 = vmatpush.msra.mxu0 %v531_v4  ;;  %v521_v14 = vld [vmem:[#allocation10 + $0x80] sm:$0xff]  ;;  %v522_v15 = vld [vmem:[#allocation10 + $0x88] sm:$0xff]  ;;  %v340_v18 = vld [vmem:[%s1423_s8 + $0x10] sm:$0xff]  ;;  %s1479_s16 = sld [smem:[#allocation4]] (!%p968_p1) }
  0x4c   : > { %562 = vmatpush.msra.mxu1 %v532_v5  ;;  %v338_v16 = vld [vmem:[%s1423_s8] sm:$0xff]  ;;  %v339_v17 = vld [vmem:[%s1423_s8 + $0x8] sm:$0xff]  ;;  %v341_v19 = vld [vmem:[%s1423_s8 + $0x18] sm:$0xff]  ;;  %v358_v26 = vrot.slane %v340_v18, 4 }
  0x4d   : > { %540 = vmatpush.msra.mxu0 %v529_v6  ;;  %v342_v20 = vld [vmem:[%s1423_s8 + $0x20] sm:$0xff]  ;;  %v346_v21 = vrot.slane %v338_v16, 4  ;;  %v352_v22 = vrot.slane %v339_v17, 4  ;;  %v343_v23 = vld [vmem:[%s1423_s8 + $0x28] sm:$0xff]  ;;  %v344_v24 = vld [vmem:[%s1423_s8 + $0x30] sm:$0xff]  ;;  %v364_v27 = vrot.slane %v341_v19, 4 }
  0x4e   : > { %563 = vmatpush.msra.mxu1 %v530_v7  ;;  %v345_v25 = vld [vmem:[%s1423_s8 + $0x38] sm:$0xff]  ;;  %v370_v28 = vrot.slane %v342_v20, 4  ;;  %v376_v31 = vrot.slane %v343_v23, 4  ;;  %v382_v32 = vrot.slane %v344_v24, 4  ;;  %v519_v33 = vld [vmem:[#allocation10 + $0x70] sm:$0xff]  ;;  %v359_v35 = vadd.f32 %v358_v26, %v340_v18  ;;  %v517_v39 = vld [vmem:[#allocation10 + $0x60] sm:$0xff] }
  0x4f   : > { %541 = vmatpush.msra.mxu0 %v527_v8  ;;  %v347_v29 = vadd.f32 %v346_v21, %v338_v16  ;;  %v353_v30 = vadd.f32 %v352_v22, %v339_v17  ;;  %v520_v34 = vld [vmem:[#allocation10 + $0x78] sm:$0xff]  ;;  %v365_v36 = vadd.f32 %v364_v27, %v341_v19  ;;  %v388_v38 = vrot.slane %v345_v25, 4  ;;  %v518_v44 = vld [vmem:[#allocation10 + $0x68] sm:$0xff]  ;;  %v597_v55 = vld [vmem:[#allocation11 + $0x70] sm:$0xff] }
  0x50   : > { %564 = vmatpush.msra.mxu1 %v528_v9  ;;  %v371_v37 = vadd.f32 %v370_v28, %v342_v20  ;;  %v377_v42 = vadd.f32 %v376_v31, %v343_v23  ;;  %v383_v43 = vadd.f32 %v382_v32, %v344_v24  ;;  %v360_v45 = vrot.slane %v359_v35, 2  ;;  %v598_v49 = vld [vmem:[#allocation11 + $0x78] sm:$0xff]  ;;  %v613_v56 = vld [vmem:[#allocation11 + $0xf0] sm:$0xff]  ;;  %v596_v3 = vld [vmem:[#allocation11 + $0x68] sm:$0xff] }
  0x51   : > { %542 = vmatpush.msra.mxu0 %v525_v10  ;;  %v348_v40 = vrot.slane %v347_v29, 2  ;;  %v354_v41 = vrot.slane %v353_v30, 2  ;;  %v366_v46 = vrot.slane %v365_v36, 2  ;;  %v389_v48 = vadd.f32 %v388_v38, %v345_v25  ;;  %v614_v50 = vld [vmem:[#allocation11 + $0xf8] sm:$0xff]  ;;  %v515_v57 = vld [vmem:[#allocation10 + $0x50] sm:$0xff]  ;;  %619 = vmatpush.msra.mxu2 %v598_v49  ;;  %v612_v4 = vld [vmem:[#allocation11 + $0xe8] sm:$0xff] }
  0x52   : > { %565 = vmatpush.msra.mxu1 %v526_v11  ;;  %v372_v47 = vrot.slane %v371_v37, 2  ;;  %v378_v53 = vrot.slane %v377_v42, 2  ;;  %v384_v54 = vrot.slane %v383_v43, 2  ;;  %v516_v58 = vld [vmem:[#allocation10 + $0x58] sm:$0xff]  ;;  %v361_v59 = vadd.f32 %v360_v45, %v359_v35  ;;  %642 = vmatpush.msra.mxu3 %v614_v50  ;;  %v513_v5 = vld [vmem:[#allocation10 + $0x40] sm:$0xff]  ;;  %v514_v6 = vld [vmem:[#allocation10 + $0x48] sm:$0xff] }
  0x53   : > { %543 = vmatpush.msra.mxu0 %v523_v12  ;;  %v349_v51 = vadd.f32 %v348_v40, %v347_v29  ;;  %v355_v52 = vadd.f32 %v354_v41, %v353_v30  ;;  %v367_v60 = vadd.f32 %v366_v46, %v365_v36  ;;  %v390_v62 = vrot.slane %v389_v48, 2  ;;  %620 = vmatpush.msra.mxu2 %v597_v55  ;;  %v511_v11 = vld [vmem:[#allocation10 + $0x30] sm:$0xff]  ;;  %v595_v16 = vld [vmem:[#allocation11 + $0x60] sm:$0xff]  ;;  %v512_v19 = vld [vmem:[#allocation10 + $0x38] sm:$0xff] }
  0x54   : > { %566 = vmatpush.msra.mxu1 %v524_v13  ;;  %v373_v61 = vadd.f32 %v372_v47, %v371_v37  ;;  %v379_v1 = vadd.f32 %v378_v53, %v377_v42  ;;  %v385_v2 = vadd.f32 %v384_v54, %v383_v43  ;;  %v362_v7 = vrot.slane %v361_v59, 1  ;;  %643 = vmatpush.msra.mxu3 %v613_v56  ;;  %v611_v17 = vld [vmem:[#allocation11 + $0xe0] sm:$0xff]  ;;  %v403_v25 = vld [vmem:[%s1430_s18 + $0x8] sm:$0xff]  ;;  %v404_v30 = vld [vmem:[%s1430_s18 + $0x10] sm:$0xff] }
  0x55   : > { %544 = vmatpush.msra.mxu0 %v521_v14  ;;  %v350_v63 = vrot.slane %v349_v51, 1  ;;  %v356_v0 = vrot.slane %v355_v52, 1  ;;  %v368_v8 = vrot.slane %v367_v60, 1  ;;  %v391_v10 = vadd.f32 %v390_v62, %v389_v48  ;;  %v509_v18 = vld [vmem:[#allocation10 + $0x20] sm:$0xff]  ;;  %621 = vmatpush.msra.mxu2 %v596_v3  ;;  %v594_v31 = vld [vmem:[#allocation11 + $0x58] sm:$0xff]  ;;  %v593_v46 = vld [vmem:[#allocation11 + $0x50] sm:$0xff] }
  0x56   : > { %567 = vmatpush.msra.mxu1 %v522_v15  ;;  %v374_v9 = vrot.slane %v373_v61, 1  ;;  %v380_v14 = vrot.slane %v379_v1, 1  ;;  %v386_v15 = vrot.slane %v385_v2, 1  ;;  %v363_v20 = vadd.f32 %v362_v7, %v361_v59  ;;  %v402_v24 = vld [vmem:[%s1430_s18] sm:$0xff]  ;;  %644 = vmatpush.msra.mxu3 %v612_v4  ;;  %v610_v32 = vld [vmem:[#allocation11 + $0xd8] sm:$0xff]  ;;  %v609_v47 = vld [vmem:[#allocation11 + $0xd0] sm:$0xff] }
  0x57   : > { %545 = vmatpush.msra.mxu0 %v519_v33  ;;  %v351_v12 = vadd.f32 %v350_v63, %v349_v51  ;;  %v357_v13 = vadd.f32 %v356_v0, %v355_v52  ;;  %v369_v21 = vadd.f32 %v368_v8, %v367_v60  ;;  %v392_v23 = vrot.slane %v391_v10, 1  ;;  %v507_v33 = vld [vmem:[#allocation10 + $0x10] sm:$0xff]  ;;  %v406_v40 = vld [vmem:[%s1430_s18 + $0x20] sm:$0xff]  ;;  %622 = vmatpush.msra.mxu2 %v595_v16  ;;  %v508_v48 = vld [vmem:[#allocation10 + $0x18] sm:$0xff] }
  0x58   : > { %568 = vmatpush.msra.mxu1 %v520_v34  ;;  %v375_v22 = vadd.f32 %v374_v9, %v373_v61  ;;  %v381_v26 = vadd.f32 %v380_v14, %v379_v1  ;;  %v387_v27 = vadd.f32 %v386_v15, %v385_v2  ;;  %v510_v34 = vld [vmem:[#allocation10 + $0x28] sm:$0xff]  ;;  %v396_v36 = vmul.f32 0.125, %v363_v20  ;;  %645 = vmatpush.msra.mxu3 %v611_v17  ;;  %v505_v59 = vld [vmem:[#allocation10] sm:$0xff]  ;;  %v408_v2 = vld [vmem:[%s1430_s18 + $0x30] sm:$0xff] }
  0x59   : > { %546 = vmatpush.msra.mxu0 %v517_v39  ;;  %v394_v28 = vmul.f32 0.125, %v351_v12  ;;  %v395_v29 = vmul.f32 0.125, %v357_v13  ;;  %v393_v35 = vadd.f32 %v392_v23, %v391_v10  ;;  %v397_v37 = vmul.f32 0.125, %v369_v21  ;;  %v405_v39 = vld [vmem:[%s1430_s18 + $0x18] sm:$0xff]  ;;  %623 = vmatpush.msra.mxu2 %v594_v31  ;;  %v506_v61 = vld [vmem:[#allocation10 + $0x8] sm:$0xff]  ;;  %v607_v12 = vld [vmem:[#allocation11 + $0xc0] sm:$0xff] }
  0x5a   : > { %569 = vmatpush.msra.mxu1 %v518_v44  ;;  %v398_v38 = vmul.f32 0.125, %v375_v22  ;;  %v399_v41 = vmul.f32 0.125, %v381_v26  ;;  %v400_v42 = vmul.f32 0.125, %v387_v27  ;;  %v407_v44 = vld [vmem:[%s1430_s18 + $0x28] sm:$0xff]  ;;  %v410_v45 = vrot.slane %v402_v24, 4  ;;  %646 = vmatpush.msra.mxu3 %v610_v32  ;;  %v409_v7 = vld [vmem:[%s1430_s18 + $0x38] sm:$0xff] }
  0x5b   : > { %547 = vmatpush.msra.mxu0 %v515_v57  ;;  %v475_v43 = vsel %vm474_vm0, %v395_v29, %v394_v28  ;;  %v401_v49 = vmul.f32 0.125, %v393_v35  ;;  %v416_v51 = vrot.slane %v403_v25, 4  ;;  %v422_v52 = vrot.slane %v404_v30, 4  ;;  %v592_v57 = vld [vmem:[#allocation11 + $0x48] sm:$0xff]  ;;  %624 = vmatpush.msra.mxu2 %v593_v46  ;;  %v590_v21 = vld [vmem:[#allocation11 + $0x38] sm:$0xff]  ;;  %v589_v31 = vld [vmem:[#allocation11 + $0x30] sm:$0xff] }
  0x5c   : > { %570 = vmatpush.msra.mxu1 %v516_v58  ;;  %v477_v50 = vsel %vm476_vm1, %v396_v36, %v475_v43  ;;  %v411_v54 = vadd.f32 %v410_v45, %v402_v24  ;;  %v428_v55 = vrot.slane %v405_v39, 4  ;;  %v434_v56 = vrot.slane %v406_v40, 4  ;;  %v608_v58 = vld [vmem:[#allocation11 + $0xc8] sm:$0xff]  ;;  %647 = vmatpush.msra.mxu3 %v609_v47  ;;  %v606_v22 = vld [vmem:[#allocation11 + $0xb8] sm:$0xff]  ;;  %v605_v32 = vld [vmem:[#allocation11 + $0xb0] sm:$0xff] }
  0x5d   : > { %548 = vmatpush.msra.mxu0 %v513_v5  ;;  %v479_v53 = vsel %vm478_vm2, %v397_v37, %v477_v50  ;;  %v417_v62 = vadd.f32 %v416_v51, %v403_v25  ;;  %v423_v63 = vadd.f32 %v422_v52, %v404_v30  ;;  %v440_v0 = vrot.slane %v407_v44, 4  ;;  %625 = vmatpush.msra.mxu2 %v592_v57  ;;  %v587_v51 = vld [vmem:[#allocation11 + $0x20] sm:$0xff] }
  0x5e   : > { %571 = vmatpush.msra.mxu1 %v514_v6  ;;  %v481_v60 = vsel %vm480_vm3, %v398_v38, %v479_v53  ;;  %v412_v3 = vrot.slane %v411_v54, 2  ;;  %v429_v4 = vadd.f32 %v428_v55, %v405_v39  ;;  %v435_v5 = vadd.f32 %v434_v56, %v406_v40  ;;  %648 = vmatpush.msra.mxu3 %v608_v58  ;;  %v603_v52 = vld [vmem:[#allocation11 + $0xa0] sm:$0xff] }
  0x5f   : > { %549 = vmatpush.msra.mxu0 %v511_v11  ;;  %v483_v1 = vsel %vm482_vm4, %v399_v41, %v481_v60  ;;  %v418_v8 = vrot.slane %v417_v62, 2  ;;  %v424_v9 = vrot.slane %v423_v63, 2  ;;  %v441_v10 = vadd.f32 %v440_v0, %v407_v44  ;;  %v591_v11 = vld [vmem:[#allocation11 + $0x40] sm:$0xff]  ;;  %v588_v41 = vld [vmem:[#allocation11 + $0x28] sm:$0xff]  ;;  %v602_v60 = vld [vmem:[#allocation11 + $0x98] sm:$0xff] }
  0x60   : > { %572 = vmatpush.msra.mxu1 %v512_v19  ;;  %v485_v6 = vsel %vm484_vm5, %v400_v42, %v483_v1  ;;  %v413_v14 = vadd.f32 %v412_v3, %v411_v54  ;;  %v430_v15 = vrot.slane %v429_v4, 2  ;;  %v436_v16 = vrot.slane %v435_v5, 2  ;;  %626 = vmatpush.msra.mxu2 %v591_v11  ;;  %v604_v42 = vld [vmem:[#allocation11 + $0xa8] sm:$0xff]  ;;  %v585_v1 = vld [vmem:[#allocation11 + $0x10] sm:$0xff]  ;;  %v583_v11 = vld [vmem:[#allocation11] sm:$0xff] }
  0x61   : > { %550 = vmatpush.msra.mxu0 %v509_v18  ;;  %v487_v13 = vsel %vm486_vm6, %v401_v49, %v485_v6  ;;  %v419_v17 = vadd.f32 %v418_v8, %v417_v62  ;;  %v425_v18 = vadd.f32 %v424_v9, %v423_v63  ;;  %v442_v19 = vrot.slane %v441_v10, 2  ;;  %649 = vmatpush.msra.mxu3 %v607_v12  ;;  %v600_v12 = vld [vmem:[#allocation11 + $0x88] sm:$0xff] }
  0x62   : > { %573 = vmatpush.msra.mxu1 %v510_v34  ;;  %v446_v20 = vrot.slane %v408_v2, 4  ;;  %v414_v23 = vrot.slane %v413_v14, 1  ;;  %v431_v24 = vadd.f32 %v430_v15, %v429_v4  ;;  %v437_v25 = vadd.f32 %v436_v16, %v435_v5  ;;  %627 = vmatpush.msra.mxu2 %v590_v21 }
  0x63   : > { %551 = vmatpush.msra.mxu0 %v507_v33  ;;  %v452_v26 = vrot.slane %v409_v7, 4  ;;  %v420_v27 = vrot.slane %v419_v17, 1  ;;  %v426_v28 = vrot.slane %v425_v18, 1  ;;  %v443_v29 = vadd.f32 %v442_v19, %v441_v10  ;;  %650 = vmatpush.msra.mxu3 %v606_v22 }
  0x64   : > { %574 = vmatpush.msra.mxu1 %v508_v48  ;;  %v447_v30 = vadd.f32 %v446_v20, %v408_v2  ;;  %v415_v33 = vadd.f32 %v414_v23, %v413_v14  ;;  %v432_v34 = vrot.slane %v431_v24, 1  ;;  %v438_v35 = vrot.slane %v437_v25, 1  ;;  %628 = vmatpush.msra.mxu2 %v589_v31  ;;  %v601_v2 = vld [vmem:[#allocation11 + $0x90] sm:$0xff] }
  0x65   : > { %552 = vmatpush.msra.mxu0 %v505_v59  ;;  %v453_v36 = vadd.f32 %v452_v26, %v409_v7  ;;  %v421_v37 = vadd.f32 %v420_v27, %v419_v17  ;;  %v427_v38 = vadd.f32 %v426_v28, %v425_v18  ;;  %v444_v39 = vrot.slane %v443_v29, 1  ;;  %651 = vmatpush.msra.mxu3 %v605_v32  ;;  %v586_v59 = vld [vmem:[#allocation11 + $0x18] sm:$0xff]  ;;  %v584_v7 = vld [vmem:[#allocation11 + $0x8] sm:$0xff]  ;;  %v1064_v18 = vld [vmem:[%s1512_s5] ss:$0 sm:$0xff] }
  0x66   : > { %575 = vmatpush.msra.mxu1 %v506_v61  ;;  %553 = vmatmul.f32.vlgmr.msra.gmra.mxu0 %v487_v13  ;;  %v448_v40 = vrot.slane %v447_v30, 2  ;;  %v433_v43 = vadd.f32 %v432_v34, %v431_v24  ;;  %v439_v44 = vadd.f32 %v438_v35, %v437_v25  ;;  %v458_v46 = vmul.f32 0.125, %v415_v33 }
  0x67   : > { %576 = vmatmul.f32.vlgmr.msra.gmra.mxu1 %v487_v13  ;;  %v454_v45 = vrot.slane %v453_v36, 2  ;;  %v445_v47 = vadd.f32 %v444_v39, %v443_v29  ;;  %v459_v49 = vmul.f32 0.125, %v421_v37  ;;  %v460_v50 = vmul.f32 0.125, %v427_v38  ;;  %629 = vmatpush.msra.mxu2 %v588_v41  ;;  %v599_v13 = vld [vmem:[#allocation11 + $0x80] sm:$0xff] }
  0x68   : > { %v449_v48 = vadd.f32 %v448_v40, %v447_v30  ;;  %v461_v54 = vmul.f32 0.125, %v433_v43  ;;  %v462_v55 = vmul.f32 0.125, %v439_v44  ;;  %652 = vmatpush.msra.mxu3 %v604_v42 }
  0x69   : > { %v455_v53 = vadd.f32 %v454_v45, %v453_v36  ;;  %v463_v57 = vmul.f32 0.125, %v445_v47  ;;  %v497_v58 = vsel %vm474_vm0, %v459_v49, %v458_v46  ;;  %630 = vmatpush.msra.mxu2 %v587_v51 }
  0x6a   : > { %v450_v56 = vrot.slane %v449_v48, 1  ;;  %v498_v62 = vsel %vm476_vm1, %v460_v50, %v497_v58  ;;  %653 = vmatpush.msra.mxu3 %v603_v52 }
  0x6b   : > { %v456_v61 = vrot.slane %v455_v53, 1  ;;  %v499_v0 = vsel %vm478_vm2, %v461_v54, %v498_v62  ;;  %631 = vmatpush.msra.mxu2 %v586_v59 }
  0x6c   : > { %v451_v63 = vadd.f32 %v450_v56, %v449_v48  ;;  %v500_v4 = vsel %vm480_vm3, %v462_v55, %v499_v0  ;;  %654 = vmatpush.msra.mxu3 %v602_v60 }
  0x6d   : > { %v457_v3 = vadd.f32 %v456_v61, %v455_v53  ;;  %v501_v6 = vsel %vm482_vm4, %v463_v57, %v500_v4  ;;  %632 = vmatpush.msra.mxu2 %v585_v1 }
  0x6e   : > { %v464_v5 = vmul.f32 0.125, %v451_v63  ;;  %655 = vmatpush.msra.mxu3 %v601_v2 }
  0x6f   : > { %v465_v8 = vmul.f32 0.125, %v457_v3  ;;  %633 = vmatpush.msra.mxu2 %v584_v7 }
  0x70   : > { %v502_v9 = vsel %vm484_vm5, %v464_v5, %v501_v6  ;;  %656 = vmatpush.msra.mxu3 %v600_v12 }
  0x71   : > { %v503_v10 = vsel %vm486_vm6, %v465_v8, %v502_v9  ;;  %634 = vmatpush.msra.mxu2 %v583_v11 }
  0x72   : > { %556 = vmatmul.f32.gmra.mxu0 %v503_v10  ;;  %579 = vmatmul.f32.gmra.mxu1 %v503_v10 }
  0x73   : > { %657 = vmatpush.msra.mxu3 %v599_v13 }
  0xe3   : > { %v554_v14 = vpop.f32.mrf.mxu0 }
  0xe4   : > { %v577_v15 = vpop.f32.mrf.mxu1  ;;  %635 = vmatmul.f32.vlgmr.msra.gmra.mxu2 %v554_v14 }
  0xe5   : > { %658 = vmatmul.f32.vlgmr.msra.gmra.mxu3 %v577_v15 }
  0xef   : > { %v557_v16 = vpop.f32.mrf.mxu0  ;;  %v580_v17 = vpop.f32.mrf.mxu1 }
  0xf0   : > { %638 = vmatmul.f32.gmra.mxu2 %v557_v16  ;;  %661 = vmatmul.f32.gmra.mxu3 %v580_v17 }
 0x167   : > { %v636_v19 = vpop.f32.mrf.mxu2 }
 0x168   : > { %v659_v20 = vpop.f32.mrf.mxu3  ;;  %v637_v21 = vadd.f32 %v1064_v18, %v636_v19 }
 0x16a   : > { %v660_v22 = vadd.f32 %v659_v20, %v637_v21 }
 0x16c   : > { %v665_v23 = vmul.f32 %v660_v22, %v660_v22 }
 0x16e   : > { %667 = vadd.xlane.f32.xlu0 %v665_v23 }
 0x173   : > { %v639_v24 = vpop.f32.mrf.mxu2  ;;  %v662_v25 = vpop.f32.mrf.mxu3 }
 0x174   : > { %v640_v26 = vadd.f32 %v1064_v18, %v639_v24 }
 0x176   : > { %v663_v27 = vadd.f32 %v662_v25, %v640_v26 }
 0x178   : > { %v666_v28 = vmul.f32 %v663_v27, %v663_v27 }
 0x17a   : > { %669 = vadd.xlane.f32.xlu0 %v666_v28 }
 0x1e1   : > { %v668_v29 = vpop.xlane.xlu0 %667 }
 0x1e2   : > { %v671_v30 = vmax.f32 %v668_v29, 1e-24 }
 0x1e4   : > { %1065 = vrsqrt.f32 %v671_v30  ;;  %vm679_vm8 = vweird.f32 %v671_v30 }
 0x1ea   : > { %v1066_v31 = vpop.eup %1065 }
 0x1eb   : > { %v674_v32 = vmul.f32 %v1066_v31, %v671_v30  ;;  %vm680_vm7 = vweird.f32 %v1066_v31 }
 0x1ec   : > { %vm681_vm9 = vmor %vm679_vm8, %vm680_vm7 }
 0x1ed   : > { %v675_v33 = vmul.f32 %v1066_v31, %v674_v32  ;;  %v670_v36 = vpop.xlane.xlu0 %669 }
 0x1ee   : > { %v672_v37 = vmax.f32 %v670_v36, 1e-24 }
 0x1ef   : > { %v676_v34 = vmul.f32 0.5, %v675_v33 }
 0x1f0   : > { %1067 = vrsqrt.f32 %v672_v37  ;;  %vm689_vm11 = vweird.f32 %v672_v37 }
 0x1f1   : > { %v677_v35 = vsub.f32 1.5, %v676_v34 }
 0x1f3   : > { %v678_v38 = vmul.f32 %v1066_v31, %v677_v35 }
 0x1f5   : > { %v682_v39 = vsel %vm681_vm9, %v1066_v31, %v678_v38 }
 0x1f6   : > { %v693_v40 = vmul.f32 %v682_v39, %v660_v22  ;;  %v1068_v41 = vpop.eup %1067 }
 0x1f7   : > { %v684_v42 = vmul.f32 %v1068_v41, %v672_v37  ;;  %vm690_vm10 = vweird.f32 %v1068_v41 }
 0x1f8   : > { %697 = vst [vmem:[%s696_s30] sm:$0xff] %v693_v40  ;;  %vm691_vm12 = vmor %vm689_vm11, %vm690_vm10 }
 0x1f9   : > { %v685_v43 = vmul.f32 %v1068_v41, %v684_v42 }
 0x1fb   : > { %v686_v44 = vmul.f32 0.5, %v685_v43 }
 0x1fd   : > { %v687_v45 = vsub.f32 1.5, %v686_v44 }
 0x1ff   : > { %v688_v46 = vmul.f32 %v1068_v41, %v687_v45 }
 0x200   : > { %703 = sbr.rel (%p968_p1) target bundleno = 1184 (0x4a0), region = 64 }
 0x201   : > { %v692_v47 = vsel %vm691_vm12, %v1068_v41, %v688_v46 }
 0x202   : > { %v694_v48 = vmul.f32 %v692_v47, %v663_v27 }
 0x204   : > { %699 = vst [vmem:[%s698_s23] sm:$0xff] %v694_v48 }
 0x205   : > { %v705_v51 = vld [vmem:[#allocation2] sm:$0xff]  ;;  %v706_v52 = vld [vmem:[#allocation2 + $0x8] sm:$0xff]  ;;  %v709_v56 = vstv %s1479_s16  ;;  %vm748_vm13 = vcmask 130048   ;;  %vm790_vm14 = vcmask 7168   ;;  %vm822_vm15 = vcmask 122880  }
 0x206   : > { %v710_v57 = vmul.f32 %v709_v56, %v705_v51  ;;  %v711_v58 = vmul.f32 %v709_v56, %v706_v52  ;;  %v1273_v45 = vmov 16.0  }
 0x20b   : > { %v708_v49 = vld [vmem:[#allocation3 + $0x8] sm:$0xff]  ;;  %v707_v50 = vld [vmem:[#allocation3] sm:$0xff] }
 0x20c   : > { %726 = vmatpush.xpose.msra.mxu0 %v708_v49  ;;  %975 = vmatpush.xpose.msra.mxu1 %v708_v49  ;;  %v735_v53 = vmul.f32 %v707_v50, %v705_v51  ;;  %v736_v54 = vmul.f32 %v708_v49, %v706_v52 }
 0x20e   : > { %v737_v55 = vadd.f32 %v736_v54, %v735_v53 }
 0x210   : > { %727 = vmatpush.xpose.msra.mxu0 %v707_v50  ;;  %976 = vmatpush.xpose.msra.mxu1 %v707_v50 }
 0x211   : > { %738 = vadd.xlane.f32.xlu0 %v737_v55 }
 0x213   : > { %728 = vmatmul.f32.vlgmr.msra.gmra.mxu0 %v710_v57  ;;  %731 = vmatmul.f32.vlgmr.msra.gmra.mxu1 %v711_v58 }
 0x284   : > { %v739_v59 = vpop.xlane.xlu0 %738 }
 0x285   : > { %v740_v60 = vrot.slane %v739_v59, 4 }
 0x287   : > { %v741_v61 = vadd.f32 %v740_v60, %v739_v59 }
 0x289   : > { %v742_v62 = vrot.slane %v741_v61, 2 }
 0x28b   : > { %v743_v63 = vadd.f32 %v742_v62, %v741_v61 }
 0x28d   : > { %v744_v0 = vrot.slane %v743_v63, 1 }
 0x28f   : > { %v745_v1 = vadd.f32 %v744_v0, %v743_v63 }
 0x290   : > { %v729_v2 = vpop.f32.mrf.mxu0  ;;  %v732_v3 = vpop.f32.mrf.mxu1 }
 0x291   : > { %977 = vpush %v745_v1  ;;  %v749_v4 = vsel %vm748_vm13, %v729_v2, -inf  ;;  %v750_v5 = vsel %vm748_vm13, %v732_v3, -inf }
 0x292   : > { %v751_v6 = vmax.f32 %v749_v4, %v750_v5 }
 0x294   : > { %752 = vmax.xlane.f32.xlu0 %v751_v6 }
 0x2c2   : > { %s1484_s20 = spop %977 }
 0x2c3   : > { %s747_s15 = smul.f32 %s1484_s20, %s1479_s16 }
 0x307   : > { %v753_v7 = vpop.xlane.xlu0 %752 }
 0x308   : > { %v754_v8 = vrot.slane %v753_v7, 4 }
 0x30a   : > { %v755_v9 = vmax.f32 %v753_v7, %v754_v8 }
 0x30c   : > { %v756_v10 = vrot.slane %v755_v9, 2 }
 0x30e   : > { %v757_v11 = vmax.f32 %v755_v9, %v756_v10 }
 0x310   : > { %v758_v12 = vrot.slane %v757_v11, 1 }
 0x312   : > { %v759_v13 = vmax.f32 %v757_v11, %v758_v12 }
 0x314   : > { %979 = vpush %v759_v13 }
 0x345   : > { %s980_s9 = spop %979 }
 0x346   : > { %v761_v14 = vstv %s980_s9 }
 0x347   : > { %v762_v15 = vsub.f32 %v729_v2, %v761_v14  ;;  %v763_v16 = vsub.f32 %v732_v3, %v761_v14 }
 0x349   : > { %v764_v17 = vmul.f32 1.442695, %v762_v15  ;;  %v766_v18 = vmul.f32 1.442695, %v763_v16 }
 0x34b   : > { %1069 = vpow2.f32 %v764_v17 }
 0x34c   : > { %1071 = vpow2.f32 %v766_v18 }
 0x351   : > { %v1070_v19 = vpop.eup %1069 }
 0x352   : > { %v1072_v20 = vpop.eup %1071  ;;  %v768_v21 = vsel %vm748_vm13, %v1070_v19, 0.0 }
 0x353   : > { %769 = vadd.xlane.f32.xlu1 %v768_v21  ;;  %v771_v22 = vsel %vm748_vm13, %v1072_v20, 0.0 }
 0x354   : > { %v780_v23 = vadd.f32 %v771_v22, %v768_v21 }
 0x356   : > { %v781_v24 = vrot.slane %v780_v23, 4 }
 0x358   : > { %v782_v25 = vadd.f32 %v781_v24, %v780_v23 }
 0x35a   : > { %v783_v26 = vrot.slane %v782_v25, 2 }
 0x35b   : > { %772 = vadd.xlane.f32.xlu1 %v771_v22 }
 0x35c   : > { %v784_v28 = vadd.f32 %v783_v26, %v782_v25 }
 0x35e   : > { %v785_v29 = vrot.slane %v784_v28, 1 }
 0x360   : > { %v786_v32 = vadd.f32 %v785_v29, %v784_v28 }
 0x3c6   : > { %v770_v27 = vpop.xlane.xlu1 %769 }
 0x3c7   : > { %1073 = vlog2.f32 %v770_v27 }
 0x3cd   : > { %v1074_v31 = vpop.eup %1073 }
 0x3ce   : > { %v773_v30 = vpop.xlane.xlu1 %772  ;;  %v775_v33 = vmul.f32 0.6931472, %v1074_v31 }
 0x3cf   : > { %1075 = vlog2.f32 %v773_v30 }
 0x3d0   : > { %1077 = vlog2.f32 %v786_v32  ;;  %v778_v36 = vadd.f32 %v775_v33, %v761_v14 }
 0x3d1   : > { %1079 = vrcp.f32 %v1273_v45 }
 0x3d2   : > { %v791_v39 = vsel %vm790_vm14, %v778_v36, 0.0 }
 0x3d5   : > { %v1076_v34 = vpop.eup %1075 }
 0x3d6   : > { %v777_v35 = vmul.f32 0.6931472, %v1076_v34  ;;  %v1078_v38 = vpop.eup %1077 }
 0x3d7   : > { %v788_v42 = vmul.f32 0.6931472, %v1078_v38  ;;  %v1080_v46 = vpop.eup %1079 }
 0x3d8   : > { %v779_v37 = vadd.f32 %v777_v35, %v761_v14  ;;  %v804_v47 = vmul.f32 16.0, %v1080_v46  ;;  %vm808_vm0 = vweird.f32 %v1080_v46 }
 0x3d9   : > { %v789_v43 = vadd.f32 %v788_v42, %v761_v14 }
 0x3da   : > { %v792_v40 = vsel %vm790_vm14, %v779_v37, 0.0  ;;  %v805_v48 = vsub.f32 1.0, %v804_v47 }
 0x3db   : > { %v793_v41 = vadd.f32 %v792_v40, %v791_v39  ;;  %v823_v44 = vsel %vm822_vm15, %v789_v43, 0.0 }
 0x3dc   : > { %v806_v52 = vmul.f32 %v1080_v46, %v805_v48 }
 0x3dd   : > { %794 = vadd.xlane.f32.xlu2 %v793_v41 }
 0x3de   : > { %v807_v55 = vadd.f32 %v1080_v46, %v806_v52 }
 0x3e0   : > { %v809_v61 = vsel %vm808_vm0, %v1080_v46, %v807_v55 }
 0x3e5   : > { %824 = vadd.xlane.f32.xlu2 %v823_v44 }
 0x450   : > { %v795_v49 = vpop.xlane.xlu2 %794 }
 0x451   : > { %v796_v50 = vrot.slane %v795_v49, 4 }
 0x453   : > { %v797_v51 = vadd.f32 %v796_v50, %v795_v49 }
 0x455   : > { %v798_v53 = vrot.slane %v797_v51, 2 }
 0x457   : > { %v799_v54 = vadd.f32 %v798_v53, %v797_v51 }
 0x458   : > { %v825_v56 = vpop.xlane.xlu2 %824 }
 0x459   : > { %v826_v57 = vrot.slane %v825_v56, 4  ;;  %v800_v58 = vrot.slane %v799_v54, 1 }
 0x45b   : > { %v827_v59 = vadd.f32 %v826_v57, %v825_v56  ;;  %v801_v60 = vadd.f32 %v800_v58, %v799_v54 }
 0x45d   : > { %v828_v62 = vrot.slane %v827_v59, 2  ;;  %981 = vpush %v801_v60 }
 0x45e   : > { %983 = vpush %v809_v61 }
 0x45f   : > { %v829_v63 = vadd.f32 %v828_v62, %v827_v59 }
 0x461   : > { %v830_v0 = vrot.slane %v829_v63, 1 }
 0x463   : > { %v831_v1 = vadd.f32 %v830_v0, %v829_v63 }
 0x465   : > { %985 = vpush %v831_v1 }
 0x48e   : > { %s982_s11 = spop %981 }
 0x48f   : > { %s984_s14 = spop %983 }
 0x490   : > { %s811_s28 = smul.f32 %s984_s14, %s982_s11 }
 0x491   : > { %s820_s29 = smul.f32 %s984_s14, %s747_s15 }
 0x493   : > { %s821_s12 = ssub.f32 %s811_s28, %s820_s29 }
 0x496   : > { %s986_s26 = spop %985 }
 0x497   : > { %s841_s10 = smul.f32 %s986_s26, %s984_s14 }
 0x499   : > { %s842_s8 = ssub.f32 %s841_s10, %s820_s29 }
 0x49b   : > { %s843_s13 = sadd.f32 %s842_s8, %s821_s12 }
 0x49d   : > { %s844_s17 = smul.f32 0.5, %s843_s13 }
 0x49f   : > { %846 = sst [smem:[#allocation13]] %s844_s17 }
 0x4a0 PF: > { %p1022_p4 = scmp.eq.s32.totalorder %s1332_s0, 1  ;;  %s853_s7 = sshll.u32 %s1513_s6, 4  ;;  %s854_s7 = int_to_ptr.hbm [resolvable:$true] %s853_s7 }
 0x4a1   : > { %s1274_s21 = smov [#allocation13]  }
 0x4a2   : > { %1000 = dma.smem_to_hbm (%p1022_p4), %s1274_s21, 16, %s854_s7, [#allocation7]  }
 0x4a3   : > { %1248 = dma.done.wait (%p1022_p4), [#allocation7], 16  }
 0x4a4   : > { %1250 = vsyncadd (%p1022_p4), [#allocation7], 4294967280 }
 0x4a5   : > { %862 = sfence }
 0x4a6 PF: > { %p22_p5 = scmp.ge.s32.totalorder %s1362_s19, 4   ;;  %s1520_s23 = smov %s1257_s24 }
 0x4a7   : > { %s1521_s24 = smov %s1261_s25  ;;  %s1522_s25 = smov %s1371_s22 }
 0x4a8   : > { %s1523_s26 = smov %s1362_s19  ;;  %24 = sbr.rel (!%p22_p5) target bundleno = 9 (0x9), region = 109 }
 0x4ad   :  { %868 = vsyncpa [#allocation6], 1 }
 0x4ae   :  { %870 = vsyncpa [#allocation6 + $0x1], 1 }
 0x4af   :  { %871 = vsyncpa [#allocation9], 1 }
 0x4b0   :  { %873 = vsyncpa [#allocation9 + $0x1], 1 }
 0x4b1   :  { %874 = vsyncpa [#allocation12], 1 }
 0x4b2   :  { %875 = vsyncpa [#allocation7], 1 }
 0x4b3   :  { %877 = vsyncpa [#allocation7 + $0x1], 1 }

</bundles_post_ra>
